<compile_context>
chip_gen: v7x
topology: tpu7x:2x2x1
jax: 0.10.0
libtpu: 0.0.40
codegen_flags: <defaults>
</compile_context>

<pallas_src>
import functools

import jax
import jax.numpy as jnp
from jax.experimental import pallas as pl
from jax.experimental.pallas import tpu as pltpu


def _attention_head_kernel(x_ref, wqkv_ref, bqkv_ref, pe_ref,
                           w1_ref, b1_ref, w2_ref, b2_ref,
                           o_ref,
                           qb_ref, kb_ref, vb_ref, acc_ref,
                           *, head, qk_dim, in_channels, hw, tile_k):
    """One grid step = one batch element; x block is (1, C, HW)."""
    dqk = qk_dim // head          # per-head q/k dim
    dv = in_channels // head      # per-head v dim
    num_kt = hw // tile_k

    x = x_ref[0]                                    # (C, hw) f32 (exact residual)
    x_b = x.astype(jnp.bfloat16)

    # Fused Q/K/V 1x1-conv projection: one MXU matmul (bf16 operands, f32 acc),
    # biases added in f32.
    qkv = jnp.dot(wqkv_ref[...], x_b,
                  preferred_element_type=jnp.float32) + bqkv_ref[...]

    pe = pe_ref[...]                                # (dqk, hw) f32
    scale = 1.0 / float(dqk) ** 0.5

    # Head-batched layouts (head, d, hw); dqk/dv are sublane multiples here so
    # the reshapes are tile-aligned views.  1/sqrt(dqk) folded into q (dqk*hw
    # multiply instead of hw*hw on the scores).  bf16 operands are written once
    # into VMEM scratch so the f32 qkv slab dies before the key-tile loop.
    q = qkv[:qk_dim].reshape(head, dqk, hw)
    k = qkv[qk_dim:2 * qk_dim].reshape(head, dqk, hw)
    v = qkv[2 * qk_dim:].reshape(head, dv, hw)
    qb_ref[...] = ((q + pe[None]) * scale).astype(jnp.bfloat16)
    kb_ref[...] = (k + pe[None]).astype(jnp.bfloat16)
    vb_ref[...] = v.astype(jnp.bfloat16)
    acc_ref[...] = jnp.zeros_like(acc_ref)

    def kt_step(j0):
        qh = qb_ref[...]                            # (head, dqk, hw) bf16
        kh = kb_ref[:, :, pl.ds(j0, tile_k)]        # (head, dqk, tile_k)
        vh = vb_ref[:, :, pl.ds(j0, tile_k)]        # (head, dv, tile_k)
        # scores[h, i, j] = sum_d qh[h, d, i] * kh[h, d, j] — one head-batched
        # dot_general instead of a per-head loop of tiny K=dqk matmuls.
        s = jax.lax.dot_general(qh, kh, (((1,), (1,)), ((0,), (0,))),
                                preferred_element_type=jnp.float32)
        # Softmax over the QUERY axis (per key column) == torch Softmax(dim=2),
        # so every key tile is self-contained (no online-softmax bookkeeping).
        s = s - jnp.max(s, axis=1, keepdims=True)
        e = jnp.exp(s)
        p = e * pl.reciprocal(jnp.sum(e, axis=1, keepdims=True), approx=True)
        # out[h, e, i] += sum_{j in tile} vh[h, e, j] * p[h, i, j]
        acc_ref[...] += jax.lax.dot_general(
            vh, p.astype(jnp.bfloat16), (((2,), (2,)), ((0,), (0,))),
            preferred_element_type=jnp.float32)

    if num_kt <= 4:
        # Short fixed trip count: static unroll (toy path has num_kt == 1).
        for kt in range(num_kt):
            kt_step(kt * tile_k)
    else:
        # Real resolutions: bounded key-tile loop; dynamic lane slices of the
        # bf16 scratch refs keep vreg live ranges per-iteration.
        @pl.loop(0, num_kt)
        def _(kt):
            kt_step(pl.multiple_of(kt * tile_k, tile_k))

    attn = acc_ref[...].reshape(in_channels, hw).astype(jnp.bfloat16)

    # MLP: conv1x1 -> Mish -> conv1x1.  Elementwise math kept in f32 (no bf16
    # VPU/EUP on v5e; keeps numeric parity with the PyTorch module).
    y1 = jnp.dot(w1_ref[...], attn,
                 preferred_element_type=jnp.float32) + b1_ref[...]
    # Single-exp Mish: tanh(softplus(y)) = ((1+e^y)^2 - 1) / ((1+e^y)^2 + 1).
    # Clamped so that for y > 30 the expression evaluates to exactly 1 in f32.
    t = jnp.exp(jnp.minimum(y1, 30.0))
    u = (1.0 + t) * (1.0 + t)
    mish = y1 * (u - 1.0) * pl.reciprocal(u + 1.0, approx=True)
    y2 = jnp.dot(w2_ref[...], mish.astype(jnp.bfloat16),
                 preferred_element_type=jnp.float32) + b2_ref[...]

    o_ref[0] = (y2 + x).astype(o_ref.dtype)


def _pick_tile_k(hw, head, budget_bytes=4 << 20):
    """Largest multiple-of-128 divisor of hw whose f32 score block
    (head, hw, tile_k) fits ~budget_bytes — keeps the attention stage inside
    v7x's 64 MiB VMEM at real UNet resolutions."""
    if hw <= 512:
        return hw
    best = None
    for tk in range(128, hw + 1, 128):
        if hw % tk == 0 and head * hw * tk * 4 <= budget_bytes:
            best = tk
    if best is None:
        for tk in range(128, hw + 1, 128):
            if hw % tk == 0:
                best = tk
                break
    return best if best is not None else hw


def attention_head_forward(x, params, *, head, qk_dim):
    """x: (B, C, H, W) float32, NCHW like the PyTorch module."""
    B, C, H, W = x.shape
    HW = H * W
    dqk = qk_dim // head
    dv = C // head

    tile_k = _pick_tile_k(HW, head)

    # Natural layout: one batch element per "parallel" grid step — no batch
    # folding into lanes (folding at non-128 offsets forces masked stores and
    # lane shifts) and no wrapper-side HBM transpose passes (pure reshapes).
    x_blk = x.astype(jnp.float32).reshape(B, C, HW)

    # Fuse Q/K/V weights & biases (single in-kernel matmul); weights bf16 for
    # the MXU, biases / PE kept f32 (added after f32 accumulation).
    wqkv = jnp.concatenate([params["wq"], params["wk"], params["wv"]],
                           axis=0).astype(jnp.bfloat16)
    bqkv = jnp.concatenate([params["bq"], params["bk"], params["bv"]], axis=0)
    weights = (wqkv, bqkv, params["pe"],
               params["w1"].astype(jnp.bfloat16), params["b1"],
               params["w2"].astype(jnp.bfloat16), params["b2"])

    def wspec(a):
        # Grid-invariant full-array weight block.
        # TODO(synk): pipeline_mode=pl.Buffered(1) would reclaim the second
        # buffer of each constant weight block (extra headroom on v7x).
        return pl.BlockSpec(a.shape, lambda b: (0,) * a.ndim)

    # Explicit VMEM budget (v5e default scoped limit is only 16 MiB; v7x has
    # 64 MiB physical) — rough byte estimate of all residents + transients.
    f32, bf16 = 4, 2
    est = (2 * 2 * C * HW * f32                                  # x/out blocks (dbl-buffered)
           + 2 * sum(int(w.size) * (bf16 if w.dtype == jnp.bfloat16 else f32)
                     for w in weights)                           # weights (dbl-buffered)
           + (2 * qk_dim + C) * HW * (f32 + bf16)                # qkv slab + q/k/v scratch
           + C * HW * f32                                        # attn accumulator
           + 2 * head * HW * tile_k * f32                        # scores + exp transient
           + 3 * C * HW * f32)                                   # y1 / mish / y2 transients
    vmem_limit = int(min(64 << 20, max(16 << 20, 2 * est)))

    kernel = functools.partial(_attention_head_kernel, head=head,
                               qk_dim=qk_dim, in_channels=C, hw=HW,
                               tile_k=tile_k)

    out = pl.pallas_call(
        kernel,
        out_shape=jax.ShapeDtypeStruct((B, C, HW), jnp.float32),
        grid=(B,),
        in_specs=[pl.BlockSpec((1, C, HW), lambda b: (b, 0, 0))]
                 + [wspec(w) for w in weights],
        out_specs=pl.BlockSpec((1, C, HW), lambda b: (b, 0, 0)),
        scratch_shapes=[pltpu.VMEM((head, dqk, HW), jnp.bfloat16),   # (q + pe) * scale
                        pltpu.VMEM((head, dqk, HW), jnp.bfloat16),   # k + pe
                        pltpu.VMEM((head, dv, HW), jnp.bfloat16),    # v
                        pltpu.VMEM((head, dv, HW), jnp.float32)],    # attn accumulator
        compiler_params=pltpu.CompilerParams(
            dimension_semantics=("parallel",),
            vmem_limit_bytes=vmem_limit),
    )(x_blk, *weights)

    return out.reshape(B, C, H, W)


def init_params(key, in_channels, squeeze, head, h, w):
    """Deterministic synthetic parameters matching the module's shapes."""
    qk_dim = in_channels // squeeze
    dqk = qk_dim // head
    HW = h * w
    keys = jax.random.split(key, 6)

    def conv1x1_init(k, out_c, in_c):
        # PyTorch Conv2d default: U(-1/sqrt(fan_in), 1/sqrt(fan_in))
        bound = 1.0 / jnp.sqrt(jnp.float32(in_c))
        kw, kb = jax.random.split(k)
        wgt = jax.random.uniform(kw, (out_c, in_c), jnp.float32, -bound, bound)
        bias = jax.random.uniform(kb, (out_c, 1), jnp.float32, -bound, bound)
        return wgt, bias

    wq, bq = conv1x1_init(keys[0], qk_dim, in_channels)
    wk, bk = conv1x1_init(keys[1], qk_dim, in_channels)
    wv, bv = conv1x1_init(keys[2], in_channels, in_channels)
    w1, b1 = conv1x1_init(keys[3], in_channels, in_channels)
    w2, b2 = conv1x1_init(keys[4], in_channels, in_channels)

    # PE: orthogonal_(empty(h*w, qk_dim//head)) then transpose -> (dqk, HW)
    a = jax.random.normal(keys[5], (HW, dqk), jnp.float32)
    qmat, r = jnp.linalg.qr(a)
    qmat = qmat * jnp.sign(jnp.diagonal(r))[None, :]
    pe = qmat.T                                                   # (dqk, HW)

    return dict(wq=wq, bq=bq, wk=wk, bk=bk, wv=wv, bv=bv, pe=pe,
                w1=w1, b1=b1, w2=w2, b2=b2)


def reference_forward(x, params, head, qk_dim):
    """Plain-JAX (pure f32) replica of the PyTorch forward for validation."""
    B, C, H, W = x.shape
    HW = H * W
    dqk = qk_dim // head
    dv = C // head
    xf = x.reshape(B, C, HW)

    proj = lambda wgt, b: jnp.einsum("oc,bcs->bos", wgt, xf) + b[None]
    q = proj(params["wq"], params["bq"]).reshape(B, head, dqk, HW) + params["pe"][None, None]
    k = proj(params["wk"], params["bk"]).reshape(B, head, dqk, HW) + params["pe"][None, None]
    v = proj(params["wv"], params["bv"]).reshape(B, head, dv, HW)

    qT = jnp.swapaxes(q, -1, -2)                                  # (B, head, HW, dqk)
    vT = jnp.swapaxes(v, -1, -2)                                  # (B, head, HW, dv)
    qk = jnp.einsum("bhid,bhdj->bhij", qT, k) / jnp.sqrt(jnp.float32(dqk))
    qk = jax.nn.softmax(qk, axis=2)                               # softmax over query axis
    out = jnp.einsum("bhij,bhjd->bhid", qk, vT)
    out = jnp.swapaxes(out, -1, -2).reshape(B, C, HW)

    y1 = jnp.einsum("oc,bcs->bos", params["w1"], out) + params["b1"][None]
    mish = y1 * jnp.tanh(jax.nn.softplus(y1))
    y2 = jnp.einsum("oc,bcs->bos", params["w2"], mish) + params["b2"][None]
    return (y2 + xf).reshape(B, C, H, W)


if __name__ == "__main__":
    in_channels, squeeze, head = 32, 2, 2
    B, H, W = 2, 8, 8
    qk_dim = in_channels // squeeze

    key = jax.random.PRNGKey(0)
    kx, kp = jax.random.split(key)
    x = jax.random.normal(kx, (B, in_channels, H, W), jnp.float32)
    params = init_params(kp, in_channels, squeeze, head, H, W)

    out = attention_head_forward(x, params, head=head, qk_dim=qk_dim)
    out = jax.block_until_ready(out)

    ref = reference_forward(x, params, head, qk_dim)
    assert out.shape == x.shape
    max_err = float(jnp.max(jnp.abs(out - ref)))
    # bf16 MXU operands + approx reciprocals -> compare against the f32
    # reference with a mixed-precision tolerance.
    assert jnp.allclose(out, ref, atol=5e-2, rtol=5e-2), max_err
    print("KERNEL_OK")
</pallas_src>

<mosaic_0001>
module attributes {stable_mosaic.version = 11 : i64} {
  func.func @_attention_head_kernel(%arg0: i32, %arg1: memref<1x32x64xf32, #tpu.memory_space<vmem>>, %arg2: memref<64x32xbf16, #tpu.memory_space<vmem>>, %arg3: memref<64x1xf32, #tpu.memory_space<vmem>>, %arg4: memref<8x64xf32, #tpu.memory_space<vmem>>, %arg5: memref<32x32xbf16, #tpu.memory_space<vmem>>, %arg6: memref<32x1xf32, #tpu.memory_space<vmem>>, %arg7: memref<32x32xbf16, #tpu.memory_space<vmem>>, %arg8: memref<32x1xf32, #tpu.memory_space<vmem>>, %arg9: memref<1x32x64xf32, #tpu.memory_space<vmem>>, %arg10: memref<2x8x64xbf16, #tpu.memory_space<vmem>>, %arg11: memref<2x8x64xbf16, #tpu.memory_space<vmem>>, %arg12: memref<2x16x64xbf16, #tpu.memory_space<vmem>>, %arg13: memref<2x16x64xf32, #tpu.memory_space<vmem>>) attributes {dimension_semantics = [#tpu.dimension_semantics<parallel>], iteration_bounds = array<i64: 2>, scalar_prefetch = 0 : i64, scratch_operands = 4 : i64, tpu.core_type = #tpu.core_type<tc>, window_params = [{transform_indices = @transform_0, window_bounds = array<i64: 1, 32, 64>}, {pipeline_mode = #tpu.pipeline_mode<synchronous>, transform_indices = @transform_1, window_bounds = array<i64: 64, 32>}, {pipeline_mode = #tpu.pipeline_mode<synchronous>, transform_indices = @transform_2, window_bounds = array<i64: 64, 1>}, {pipeline_mode = #tpu.pipeline_mode<synchronous>, transform_indices = @transform_3, window_bounds = array<i64: 8, 64>}, {pipeline_mode = #tpu.pipeline_mode<synchronous>, transform_indices = @transform_4, window_bounds = array<i64: 32, 32>}, {pipeline_mode = #tpu.pipeline_mode<synchronous>, transform_indices = @transform_5, window_bounds = array<i64: 32, 1>}, {pipeline_mode = #tpu.pipeline_mode<synchronous>, transform_indices = @transform_6, window_bounds = array<i64: 32, 32>}, {pipeline_mode = #tpu.pipeline_mode<synchronous>, transform_indices = @transform_7, window_bounds = array<i64: 32, 1>}, {transform_indices = @transform_8, window_bounds = array<i64: 1, 32, 64>}]} {
    %c0 = arith.constant 0 : index
    %c0_0 = arith.constant 0 : index
    %c0_1 = arith.constant 0 : index
    %0 = vector.load %arg1[%c0, %c0_0, %c0_1] : memref<1x32x64xf32, #tpu.memory_space<vmem>>, vector<1x32x64xf32>
    %1 = vector.shape_cast %0 : vector<1x32x64xf32> to vector<32x64xf32>
    %2 = arith.truncf %1 : vector<32x64xf32> to vector<32x64xbf16>
    %c0_2 = arith.constant 0 : index
    %c0_3 = arith.constant 0 : index
    %3 = vector.load %arg2[%c0_2, %c0_3] : memref<64x32xbf16, #tpu.memory_space<vmem>>, vector<64x32xbf16>
    %cst = arith.constant dense<0.000000e+00> : vector<64x64xf32>
    %4 = tpu.matmul %3, %2, %cst {dimension_numbers = #tpu.dot_dimension_numbers<[1], [0], [0], [1], [0, 0, 1, 1], [], []>} : vector<64x32xbf16>, vector<32x64xbf16>, vector<64x64xf32> -> vector<64x64xf32>
    %c0_4 = arith.constant 0 : index
    %c0_5 = arith.constant 0 : index
    %5 = vector.load %arg3[%c0_4, %c0_5] : memref<64x1xf32, #tpu.memory_space<vmem>>, vector<64x1xf32>
    %6 = vector.broadcast %5 : vector<64x1xf32> to vector<64x64xf32>
    %7 = arith.addf %4, %6 : vector<64x64xf32>
    %c0_6 = arith.constant 0 : index
    %c0_7 = arith.constant 0 : index
    %8 = vector.load %arg4[%c0_6, %c0_7] : memref<8x64xf32, #tpu.memory_space<vmem>>, vector<8x64xf32>
    %9 = vector.extract_strided_slice %7 {offsets = [0, 0], sizes = [16, 64], strides = [1, 1]} : vector<64x64xf32> to vector<16x64xf32>
    %10 = vector.shape_cast %9 : vector<16x64xf32> to vector<2x8x64xf32>
    %11 = vector.extract_strided_slice %7 {offsets = [16, 0], sizes = [16, 64], strides = [1, 1]} : vector<64x64xf32> to vector<16x64xf32>
    %12 = vector.shape_cast %11 : vector<16x64xf32> to vector<2x8x64xf32>
    %13 = vector.extract_strided_slice %7 {offsets = [32, 0], sizes = [32, 64], strides = [1, 1]} : vector<64x64xf32> to vector<32x64xf32>
    %14 = vector.shape_cast %13 : vector<32x64xf32> to vector<2x16x64xf32>
    %15 = vector.shape_cast %8 : vector<8x64xf32> to vector<1x8x64xf32>
    %16 = vector.broadcast %15 : vector<1x8x64xf32> to vector<2x8x64xf32>
    %17 = arith.addf %10, %16 : vector<2x8x64xf32>
    %cst_8 = arith.constant 0.353553385 : f32
    %18 = vector.broadcast %cst_8 : f32 to vector<2x8x64xf32>
    %19 = arith.mulf %17, %18 : vector<2x8x64xf32>
    %20 = arith.truncf %19 : vector<2x8x64xf32> to vector<2x8x64xbf16>
    %c0_9 = arith.constant 0 : index
    %c0_10 = arith.constant 0 : index
    %c0_11 = arith.constant 0 : index
    %21 = vector.load %arg10[%c0_9, %c0_10, %c0_11] : memref<2x8x64xbf16, #tpu.memory_space<vmem>>, vector<2x8x64xbf16>
    tpu.vector_store %arg10[%c0_9, %c0_10, %c0_11], %20 {strides = array<i32>} : memref<2x8x64xbf16, #tpu.memory_space<vmem>>, vector<2x8x64xbf16>,
    %22 = vector.shape_cast %8 : vector<8x64xf32> to vector<1x8x64xf32>
    %23 = vector.broadcast %22 : vector<1x8x64xf32> to vector<2x8x64xf32>
    %24 = arith.addf %12, %23 : vector<2x8x64xf32>
    %25 = arith.truncf %24 : vector<2x8x64xf32> to vector<2x8x64xbf16>
    %c0_12 = arith.constant 0 : index
    %c0_13 = arith.constant 0 : index
    %c0_14 = arith.constant 0 : index
    %26 = vector.load %arg11[%c0_12, %c0_13, %c0_14] : memref<2x8x64xbf16, #tpu.memory_space<vmem>>, vector<2x8x64xbf16>
    tpu.vector_store %arg11[%c0_12, %c0_13, %c0_14], %25 {strides = array<i32>} : memref<2x8x64xbf16, #tpu.memory_space<vmem>>, vector<2x8x64xbf16>,
    %27 = arith.truncf %14 : vector<2x16x64xf32> to vector<2x16x64xbf16>
    %c0_15 = arith.constant 0 : index
    %c0_16 = arith.constant 0 : index
    %c0_17 = arith.constant 0 : index
    %28 = vector.load %arg12[%c0_15, %c0_16, %c0_17] : memref<2x16x64xbf16, #tpu.memory_space<vmem>>, vector<2x16x64xbf16>
    tpu.vector_store %arg12[%c0_15, %c0_16, %c0_17], %27 {strides = array<i32>} : memref<2x16x64xbf16, #tpu.memory_space<vmem>>, vector<2x16x64xbf16>,
    %cst_18 = arith.constant 0.000000e+00 : f32
    %29 = vector.broadcast %cst_18 : f32 to vector<2x16x64xf32>
    %c0_19 = arith.constant 0 : index
    %c0_20 = arith.constant 0 : index
    %c0_21 = arith.constant 0 : index
    %30 = vector.load %arg13[%c0_19, %c0_20, %c0_21] : memref<2x16x64xf32, #tpu.memory_space<vmem>>, vector<2x16x64xf32>
    tpu.vector_store %arg13[%c0_19, %c0_20, %c0_21], %29 {strides = array<i32>} : memref<2x16x64xf32, #tpu.memory_space<vmem>>, vector<2x16x64xf32>,
    %c0_22 = arith.constant 0 : index
    %c0_23 = arith.constant 0 : index
    %c0_24 = arith.constant 0 : index
    %31 = vector.load %arg10[%c0_22, %c0_23, %c0_24] : memref<2x8x64xbf16, #tpu.memory_space<vmem>>, vector<2x8x64xbf16>
    %c0_25 = arith.constant 0 : index
    %c0_26 = arith.constant 0 : index
    %c0_27 = arith.constant 0 : index
    %32 = vector.load %arg11[%c0_25, %c0_26, %c0_27] : memref<2x8x64xbf16, #tpu.memory_space<vmem>>, vector<2x8x64xbf16>
    %c0_28 = arith.constant 0 : index
    %c0_29 = arith.constant 0 : index
    %c0_30 = arith.constant 0 : index
    %33 = vector.load %arg12[%c0_28, %c0_29, %c0_30] : memref<2x16x64xbf16, #tpu.memory_space<vmem>>, vector<2x16x64xbf16>
    %cst_31 = arith.constant dense<0.000000e+00> : vector<2x64x64xf32>
    %34 = tpu.matmul %31, %32, %cst_31 {dimension_numbers = #tpu.dot_dimension_numbers<[1], [1], [2], [2], [0, 0, 0, 2, 1, 2], [0], [0]>} : vector<2x8x64xbf16>, vector<2x8x64xbf16>, vector<2x64x64xf32> -> vector<2x64x64xf32>
    %cst_32 = arith.constant dense<0xFF800000> : vector<2x64xf32>
    %35 = vector.multi_reduction <maximumf>, %34, %cst_32 [1] : vector<2x64x64xf32> to vector<2x64xf32>
    %36 = vector.shape_cast %35 : vector<2x64xf32> to vector<2x1x64xf32>
    %37 = vector.broadcast %36 : vector<2x1x64xf32> to vector<2x64x64xf32>
    %38 = arith.subf %34, %37 : vector<2x64x64xf32>
    %39 = math.exp %38 : vector<2x64x64xf32>
    %cst_33 = arith.constant dense<0.000000e+00> : vector<2x64xf32>
    %40 = vector.multi_reduction <add>, %39, %cst_33 [1] : vector<2x64x64xf32> to vector<2x64xf32>
    %41 = vector.shape_cast %40 : vector<2x64xf32> to vector<2x1x64xf32>
    %42 = tpu.reciprocal %41 {approx = true} : vector<2x1x64xf32> -> vector<2x1x64xf32>
    %43 = vector.broadcast %42 : vector<2x1x64xf32> to vector<2x64x64xf32>
    %44 = arith.mulf %39, %43 : vector<2x64x64xf32>
    %c0_34 = arith.constant 0 : index
    %c0_35 = arith.constant 0 : index
    %c0_36 = arith.constant 0 : index
    %45 = vector.load %arg13[%c0_34, %c0_35, %c0_36] : memref<2x16x64xf32, #tpu.memory_space<vmem>>, vector<2x16x64xf32>
    %46 = arith.truncf %44 : vector<2x64x64xf32> to vector<2x64x64xbf16>
    %cst_37 = arith.constant dense<0.000000e+00> : vector<2x16x64xf32>
    %47 = tpu.matmul %33, %46, %cst_37 {dimension_numbers = #tpu.dot_dimension_numbers<[2], [2], [1], [1], [0, 0, 0, 1, 1, 1], [0], [0]>} : vector<2x16x64xbf16>, vector<2x64x64xbf16>, vector<2x16x64xf32> -> vector<2x16x64xf32>
    %48 = arith.addf %45, %47 : vector<2x16x64xf32>
    %c0_38 = arith.constant 0 : index
    %c0_39 = arith.constant 0 : index
    %c0_40 = arith.constant 0 : index
    %49 = vector.load %arg13[%c0_38, %c0_39, %c0_40] : memref<2x16x64xf32, #tpu.memory_space<vmem>>, vector<2x16x64xf32>
    tpu.vector_store %arg13[%c0_38, %c0_39, %c0_40], %48 {strides = array<i32>} : memref<2x16x64xf32, #tpu.memory_space<vmem>>, vector<2x16x64xf32>,
    %c0_41 = arith.constant 0 : index
    %c0_42 = arith.constant 0 : index
    %c0_43 = arith.constant 0 : index
    %50 = vector.load %arg13[%c0_41, %c0_42, %c0_43] : memref<2x16x64xf32, #tpu.memory_space<vmem>>, vector<2x16x64xf32>
    %51 = vector.shape_cast %50 : vector<2x16x64xf32> to vector<32x64xf32>
    %52 = arith.truncf %51 : vector<32x64xf32> to vector<32x64xbf16>
    %c0_44 = arith.constant 0 : index
    %c0_45 = arith.constant 0 : index
    %53 = vector.load %arg5[%c0_44, %c0_45] : memref<32x32xbf16, #tpu.memory_space<vmem>>, vector<32x32xbf16>
    %cst_46 = arith.constant dense<0.000000e+00> : vector<32x64xf32>
    %54 = tpu.matmul %53, %52, %cst_46 {dimension_numbers = #tpu.dot_dimension_numbers<[1], [0], [0], [1], [0, 0, 1, 1], [], []>} : vector<32x32xbf16>, vector<32x64xbf16>, vector<32x64xf32> -> vector<32x64xf32>
    %c0_47 = arith.constant 0 : index
    %c0_48 = arith.constant 0 : index
    %55 = vector.load %arg6[%c0_47, %c0_48] : memref<32x1xf32, #tpu.memory_space<vmem>>, vector<32x1xf32>
    %56 = vector.broadcast %55 : vector<32x1xf32> to vector<32x64xf32>
    %57 = arith.addf %54, %56 : vector<32x64xf32>
    %cst_49 = arith.constant 3.000000e+01 : f32
    %58 = vector.broadcast %cst_49 : f32 to vector<32x64xf32>
    %59 = arith.minimumf %57, %58 : vector<32x64xf32>
    %60 = math.exp %59 : vector<32x64xf32>
    %cst_50 = arith.constant 1.000000e+00 : f32
    %61 = vector.broadcast %cst_50 : f32 to vector<32x64xf32>
    %62 = arith.addf %61, %60 : vector<32x64xf32>
    %cst_51 = arith.constant 1.000000e+00 : f32
    %63 = vector.broadcast %cst_51 : f32 to vector<32x64xf32>
    %64 = arith.addf %63, %60 : vector<32x64xf32>
    %65 = arith.mulf %62, %64 : vector<32x64xf32>
    %cst_52 = arith.constant 1.000000e+00 : f32
    %66 = vector.broadcast %cst_52 : f32 to vector<32x64xf32>
    %67 = arith.subf %65, %66 : vector<32x64xf32>
    %68 = arith.mulf %57, %67 : vector<32x64xf32>
    %cst_53 = arith.constant 1.000000e+00 : f32
    %69 = vector.broadcast %cst_53 : f32 to vector<32x64xf32>
    %70 = arith.addf %65, %69 : vector<32x64xf32>
    %71 = tpu.reciprocal %70 {approx = true} : vector<32x64xf32> -> vector<32x64xf32>
    %72 = arith.mulf %68, %71 : vector<32x64xf32>
    %c0_54 = arith.constant 0 : index
    %c0_55 = arith.constant 0 : index
    %73 = vector.load %arg7[%c0_54, %c0_55] : memref<32x32xbf16, #tpu.memory_space<vmem>>, vector<32x32xbf16>
    %74 = arith.truncf %72 : vector<32x64xf32> to vector<32x64xbf16>
    %cst_56 = arith.constant dense<0.000000e+00> : vector<32x64xf32>
    %75 = tpu.matmul %73, %74, %cst_56 {dimension_numbers = #tpu.dot_dimension_numbers<[1], [0], [0], [1], [0, 0, 1, 1], [], []>} : vector<32x32xbf16>, vector<32x64xbf16>, vector<32x64xf32> -> vector<32x64xf32>
    %c0_57 = arith.constant 0 : index
    %c0_58 = arith.constant 0 : index
    %76 = vector.load %arg8[%c0_57, %c0_58] : memref<32x1xf32, #tpu.memory_space<vmem>>, vector<32x1xf32>
    %77 = vector.broadcast %76 : vector<32x1xf32> to vector<32x64xf32>
    %78 = arith.addf %75, %77 : vector<32x64xf32>
    %79 = arith.addf %78, %1 : vector<32x64xf32>
    %c0_59 = arith.constant 0 : index
    %c0_60 = arith.constant 0 : index
    %c0_61 = arith.constant 0 : index
    %80 = vector.load %arg9[%c0_59, %c0_60, %c0_61] : memref<1x32x64xf32, #tpu.memory_space<vmem>>, vector<1x32x64xf32>
    %81 = vector.shape_cast %80 : vector<1x32x64xf32> to vector<32x64xf32>
    %82 = vector.shape_cast %79 : vector<32x64xf32> to vector<1x32x64xf32>
    tpu.vector_store %arg9[%c0_59, %c0_60, %c0_61], %82 {strides = array<i32>} : memref<1x32x64xf32, #tpu.memory_space<vmem>>, vector<1x32x64xf32>,
    return
  }
  func.func @transform_0(%arg0: i32) -> (i32, i32, i32) {
    %c0_i32 = arith.constant 0 : i32
    %c0_i32_0 = arith.constant 0 : i32
    %c0_i32_1 = arith.constant 0 : i32
    return %arg0, %c0_i32, %c0_i32_0 : i32, i32, i32
  }
  func.func @transform_1(%arg0: i32) -> (i32, i32) {
    %c0_i32 = arith.constant 0 : i32
    %c0_i32_0 = arith.constant 0 : i32
    %c0_i32_1 = arith.constant 0 : i32
    return %c0_i32, %c0_i32_0 : i32, i32
  }
  func.func @transform_2(%arg0: i32) -> (i32, i32) {
    %c0_i32 = arith.constant 0 : i32
    %c0_i32_0 = arith.constant 0 : i32
    %c0_i32_1 = arith.constant 0 : i32
    return %c0_i32, %c0_i32_0 : i32, i32
  }
  func.func @transform_3(%arg0: i32) -> (i32, i32) {
    %c0_i32 = arith.constant 0 : i32
    %c0_i32_0 = arith.constant 0 : i32
    %c0_i32_1 = arith.constant 0 : i32
    return %c0_i32, %c0_i32_0 : i32, i32
  }
  func.func @transform_4(%arg0: i32) -> (i32, i32) {
    %c0_i32 = arith.constant 0 : i32
    %c0_i32_0 = arith.constant 0 : i32
    %c0_i32_1 = arith.constant 0 : i32
    return %c0_i32, %c0_i32_0 : i32, i32
  }
  func.func @transform_5(%arg0: i32) -> (i32, i32) {
    %c0_i32 = arith.constant 0 : i32
    %c0_i32_0 = arith.constant 0 : i32
    %c0_i32_1 = arith.constant 0 : i32
    return %c0_i32, %c0_i32_0 : i32, i32
  }
  func.func @transform_6(%arg0: i32) -> (i32, i32) {
    %c0_i32 = arith.constant 0 : i32
    %c0_i32_0 = arith.constant 0 : i32
    %c0_i32_1 = arith.constant 0 : i32
    return %c0_i32, %c0_i32_0 : i32, i32
  }
  func.func @transform_7(%arg0: i32) -> (i32, i32) {
    %c0_i32 = arith.constant 0 : i32
    %c0_i32_0 = arith.constant 0 : i32
    %c0_i32_1 = arith.constant 0 : i32
    return %c0_i32, %c0_i32_0 : i32, i32
  }
  func.func @transform_8(%arg0: i32) -> (i32, i32, i32) {
    %c0_i32 = arith.constant 0 : i32
    %c0_i32_0 = arith.constant 0 : i32
    %c0_i32_1 = arith.constant 0 : i32
    return %arg0, %c0_i32, %c0_i32_0 : i32, i32, i32
  }
}

</mosaic_0001>

<bundles_post_ra>
// kernel: tpu_custom_call.1
= control target key start
LH: loop header
LB: loop body
LE: loop exit
PB: predicated region body
PF: predicated region fallthrough
CT: control target
= control target key end

     0   :  { %13 = vsyncpa [#allocation7], 0  ;;  %s2007_s0 = inlined_call_operand.vmem [shape: f32[2,32,64], index: 0, kind: input, shape index: {}]   ;;  %s2008_s1 = inlined_call_operand.vmem [shape: bf16[64,32], index: 1, kind: input, shape index: {}]   ;;  %s2009_s2 = inlined_call_operand.vmem [shape: f32[64,1], index: 2, kind: input, shape index: {}]   ;;  %s2010_s3 = inlined_call_operand.vmem [shape: f32[8,64], index: 3, kind: input, shape index: {}]   ;;  %s2011_s4 = inlined_call_operand.vmem [shape: bf16[32,32], index: 4, kind: input, shape index: {}]   ;;  %s2012_s5 = inlined_call_operand.vmem [shape: f32[32,1], index: 5, kind: input, shape index: {}]   ;;  %s2013_s6 = inlined_call_operand.vmem [shape: bf16[32,32], index: 6, kind: input, shape index: {}]   ;;  %s2014_s7 = inlined_call_operand.vmem [shape: f32[32,1], index: 7, kind: input, shape index: {}]   ;;  %s2015_s8 = inlined_call_operand.hbm [shape: f32[2,32,64], index: 8, kind: output, shape index: {}]  }
   0x1   :  { %15 = vsyncpa [#allocation7 + $0x1], 0  ;;  %s1663_s27 = smov 0   ;;  %s1665_s28 = smov 0  }
   0x2   :  { %s1667_s29 = smov 0   ;;  %s1669_s30 = smov 0  }
   0x3 LB: > { %s1684_s9 = sadd.s32 4294967295, %s1610_s30   ;;  %s1290_s10 = sadd.s32 4294967294, %s1610_s30   ;;  %s1610_s30 = sphi %s1669_s30, %s2021_s30   ;;  %s1606_s29 = sphi %s1667_s29, %s2020_s29   ;;  %s1602_s28 = sphi %s1665_s28, %s2019_s28   ;;  %s1598_s27 = sphi %s1663_s27, %s2018_s27  }
   0x4   : > { %s1688_s11 = sadd.s32 1, %s1610_s30   ;;  %s201_s12 = sadd.s32 1, %s1606_s29 }
   0x5   : > { %s198_s13 = ssub.s32 %s1610_s30, %s1688_s11  ;;  %p211_p0 = scmp.ne.s32.totalorder %s1606_s29, %s1602_s28 }
   0x6   : > { %p199_p1 = scmp.eq.s32.totalorder %s198_s13, 0  ;;  %p212_p2 = scmp.eq.s32.totalorder %s1684_s9, 1 }
   0x7   : > { %p217_p3 = scmp.ne.s32.totalorder %s1602_s28, %s1598_s27  ;;  %p218_p4 = scmp.eq.s32.totalorder %s1290_s10, 1 }
   0x8   : > { %s1699_s14 = scalar_select %p199_p1, %s1606_s29, %s201_s12  }
   0x9   : > { %p1701_p5 = por %p212_p2, %p211_p0  ;;  %p1705_p6 = por %p218_p4, %p217_p3 }
   0xa   : > { %p1293_p7 = scmp.ge.s32.totalorder %s1610_s30, 1  ;;  %p265_p8 = scmp.lt.s32.totalorder %s1610_s30, 3 }
   0xc   : > { %p266_p9 = pnand %p1293_p7, %p265_p8 }
   0xd   : > { %p299_p10 = scmp.lt.s32.totalorder (!%p266_p9), %s1684_s9, 1  ;;  %v1488_v0 = vld [vmem:[%s2008_s1] sm:$0xff] (!%p266_p9)   ;;  %vm387_vm0 = vcmask (!%p266_p9), 261120   ;;  %v321_v2 = vld [vmem:[%s2009_s2 + $0x10] sm:$0xff] (!%p266_p9)  ;;  %v1612_v3 = vmov (!%p266_p9), 0   ;;  %v320_v4 = vld [vmem:[%s2009_s2 + $0x8] sm:$0xff] (!%p266_p9) }
   0xe   : > { %269 = sbr.rel (%p266_p9) target bundleno = 1447 (0x5a7), region = 52  ;;  %1372 = vmatprep.mubr.msk.bf16.mxu0 (!%p266_p9), %vm387_vm0, %v1488_v0  ;;  %v319_v1 = vld [vmem:[%s2009_s2] sm:$0xff] (!%p266_p9)  ;;  %1486 = vset.pattern.permute.xlu0 (!%p266_p9), %v1612_v3  ;;  %v322_v5 = vld [vmem:[%s2009_s2 + $0x18] sm:$0xff] (!%p266_p9)  ;;  %v1489_v12 = vld [vmem:[%s2008_s1 + $0x8] sm:$0xff] (!%p266_p9)   ;;  %vm472_vm1 = vcmask (!%p266_p9), 519168   ;;  %vm525_vm2 = vcmask (!%p266_p9), 1043456  }
   0xf   : > { %1487 = vset.pattern.permute.xlu1 (!%p266_p9), %v1612_v3  ;;  %329 = vperm.xlu0 (!%p266_p9), %1486, %v319_v1   ;;  %v1490_v13 = vld [vmem:[%s2008_s1 + $0x10] sm:$0xff] (!%p266_p9)   ;;  %v1491_v14 = vld [vmem:[%s2008_s1 + $0x18] sm:$0xff] (!%p266_p9)   ;;  %v465_v18 = vld [vmem:[%s2010_s3] sm:$0xff] (!%p266_p9)  ;;  %vm512_vm3 = vcmask (!%p266_p9), 64512   ;;  %vm483_vm4 = vcmask (!%p266_p9), 523264   ;;  %vm1614_vm5 = vmmov (!%p266_p9), 0  }
  0x10   : > { %339 = vperm.xlu1 (!%p266_p9), %1487, %v321_v2   ;;  %v324_v48 = vld [vmem:[%s2009_s2 + $0x28] sm:$0xff] (!%p266_p9)  ;;  %v323_v49 = vld [vmem:[%s2009_s2 + $0x20] sm:$0xff] (!%p266_p9)  ;;  %v326_v50 = vld [vmem:[%s2009_s2 + $0x38] sm:$0xff] (!%p266_p9)  ;;  %s296_s20 = sand.u32 (!%p266_p9), 1, %s1602_s28  }
  0x11   : > { %v325_v51 = vld [vmem:[%s2009_s2 + $0x30] sm:$0xff] (!%p266_p9)  ;;  %v983_v52 = vld [vmem:[%s2012_s5 + $0x8] sm:$0xff] (!%p266_p9)  ;;  %v982_v53 = vld [vmem:[%s2012_s5] sm:$0xff] (!%p266_p9)  ;;  %s1294_s21 = sshll.u32 (!%p266_p9), %s296_s20, 5 }
  0x12   : > { %v985_v54 = vld [vmem:[%s2012_s5 + $0x18] sm:$0xff] (!%p266_p9)  ;;  %v984_v55 = vld [vmem:[%s2012_s5 + $0x10] sm:$0xff] (!%p266_p9)  ;;  %v1118_v56 = vld [vmem:[%s2014_s7 + $0x8] sm:$0xff] (!%p266_p9)  ;;  %s298_s22 = scalar_lea.vmem (!%p266_p9), [#allocation6], %s1294_s21 }
  0x13   : > { %334 = vperm.xlu0 (!%p266_p9), %1486, %v320_v4   ;;  %v1117_v57 = vld [vmem:[%s2014_s7] sm:$0xff] (!%p266_p9)  ;;  %v1120_v58 = vld [vmem:[%s2014_s7 + $0x18] sm:$0xff] (!%p266_p9)  ;;  %v1119_v59 = vld [vmem:[%s2014_s7 + $0x10] sm:$0xff] (!%p266_p9)  ;;  %s1228_s23 = sshll.u32 (!%p266_p9), %s298_s22, 4  ;;  %s1960_s23 = int_to_ptr.vmem [resolvable:$true] %s1228_s23 }
  0x14   : > { %344 = vperm.xlu1 (!%p266_p9), %1487, %v322_v5   ;;  %s1548_s12 = scalar_lea.vmem (!%p266_p9), %s1960_s23, 512 }
  0x15   : > { %s300_s19 = scalar_select %p299_p10, %s1684_s9, 1 }
  0x16   : > { %p1549_p11 = scmp.ne.s32.totalorder %s1960_s23, %s1548_s12 }
  0x17   : > { %s1332_s24 = sshll.u32 %s300_s19, 5 }
  0x18   : > { %s303_s13 = scalar_lea.vmem %s2007_s0, %s1332_s24  ;;  %s1333_s24 = sshll.u32 %s1684_s9, 9 }
  0x19   : > { %v1732_v6 = vld [vmem:[%s303_s13] sm:$0xff]  ;;  %v1734_v7 = vld [vmem:[%s303_s13 + $0x8] sm:$0xff]  ;;  %v1736_v8 = vld [vmem:[%s303_s13 + $0x10] sm:$0xff]  ;;  %s1958_s10 = scalar_lea.hbm %s2015_s8, %s1333_s24  ;;  %s1966_s9 = scalar_lea.sflag [#allocation7], %s296_s20 }
  0x1a   : > { %v309_v9 = vpack.c.bf16 %v1734_v7, %v1732_v6  ;;  %v1740_v10 = vld [vmem:[%s303_s13 + $0x18] sm:$0xff]  ;;  %p1550_p12 = pnand %p1549_p11, %p1701_p5  ;;  %s1615_s13 = smov [#allocation6]  }
  0x1b   : > { %v310_v11 = vpack.c.bf16 %v1740_v10, %v1736_v8  ;;  %s1552_s17 = sshll.u32 %s1615_s13, 4  ;;  %s1553_s17 = int_to_ptr.vmem [resolvable:$false] %s1552_s17 }
  0x1c   : > { %1368 = vmatprep.subr.bf16.mxu0 %v309_v9  ;;  %p1551_p13 = pneg %p1550_p12  ;;  %s1554_s18 = scalar_lea.vmem %s1553_s17, 1024 }
  0x1d   : > { %1369 = vmatpush3.bf16.msra.mxu0 %v309_v9  ;;  %p1555_p0 = scmp.lt.s32.totalorder %s1960_s23, %s1553_s17  ;;  %p1556_p1 = scmp.lt.s32.totalorder %s1554_s18, %s1548_s12 }
  0x1e   : > { %1370 = vmatprep.subr.bf16.mxu0 %v310_v11 }
  0x1f   : > { %p1557_p2 = por %p1556_p1, %p1555_p0 }
  0x21   : > { %1371 = vmatpush3.bf16.msra.mxu0 %v310_v11  ;;  %p1558_p3 = pnand %p1557_p2, %p1551_p13 }
  0x24   : > { %1373 = vmatmul.mubr.msk.bf16.vlgmr.msra.gmra.mrb[0].mxu0 %vm387_vm0, %v1489_v12 }
  0x25   : > { %1376 = vmatprep.mubr.msk.bf16.mxu0 %vm387_vm0, %v1490_v13 }
  0x2c   : > { %1377 = vmatmul.mubr.msk.bf16.gmra.mrb[4].mxu0 %vm387_vm0, %v1491_v14 }
  0x8e   : > { %v330_v16 = vpop.permute.xlu0 %329 }
  0x8f   : > { %v340_v15 = vpop.permute.xlu1 %339 }
  0x92   : > { %v335_v25 = vpop.permute.xlu0 %334 }
  0x93   : > { %v345_v19 = vpop.permute.xlu1 %344 }
  0xf7   : > { %v1374_v17 = vpop.f32.mrb[0].mxu0 }
  0xf8   : > { %v443_v20 = vadd.f32 %v1374_v17, %v340_v15  ;;  %v434_v21 = vpop.f32.mrb[1].mxu0 }
  0xf9   : > { %v435_v22 = vadd.f32 %v434_v21, %v330_v16  ;;  %v1375_v23 = vpop.f32.mrb[2].mxu0 }
  0xfa   : > { %v475_v24 = vadd.f32 %v465_v18, %v443_v20  ;;  %v446_v26 = vadd.f32 %v1375_v23, %v345_v19  ;;  %v437_v27 = vpop.f32.mrb[3].mxu0 }
  0xfb   : > { %v466_v28 = vadd.f32 %v465_v18, %v435_v22  ;;  %v438_v29 = vadd.f32 %v437_v27, %v335_v25 }
  0xfc   : > { %v477_v30 = vpack.c.bf16 %v475_v24, %v475_v24  ;;  %v476_v31 = vadd.f32 %v465_v18, %v446_v26 }
  0xfd   : > { %v468_v32 = vmul.f32 0.35355338, %v466_v28  ;;  %v467_v33 = vadd.f32 %v465_v18, %v438_v29  ;;  %v1613_v18 = vmov 0.0  }
  0xfe   : > { %479 = vst.msk [vmem:[#allocation3] sm:$0xf] %vm472_vm1, %v477_v30  ;;  %v478_v34 = vpack.c.bf16 %v476_v31, %v476_v31  ;;  %1400 = vmatprep.subr.bf16.mxu0 %v1613_v18  ;;  %1408 = vmatprep.mubr.msk.bf16.mxu0 %vm1614_vm5, %v1613_v18 }
  0xff   : > { %v470_v35 = vpack.c.bf16 %v468_v32, %v468_v32  ;;  %v469_v36 = vmul.f32 0.35355338, %v467_v33  ;;  %v1378_v44 = vpop.f32.mrb[4].mxu0  ;;  %486 = vst.msk [vmem:[#allocation5] sm:$0xff] %vm483_vm4, %v1613_v18  ;;  %487 = vst.msk [vmem:[#allocation5 + $0x8] sm:$0xff] %vm483_vm4, %v1613_v18 }
 0x100   : > { %480 = vst.msk [vmem:[#allocation3 + $0x4] sm:$0xf] %vm472_vm1, %v478_v34  ;;  %v450_v45 = vpop.f32.mrb[5].mxu0 }
 0x101   : > { %473 = vst.msk [vmem:[#allocation2] sm:$0xf] %vm472_vm1, %v470_v35  ;;  %v471_v37 = vpack.c.bf16 %v469_v36, %v469_v36  ;;  %v1379_v46 = vpop.f32.mrb[6].mxu0 }
 0x102   : > { %v453_v47 = vpop.f32.mrb[7].mxu0  ;;  %488 = vst.msk [vmem:[#allocation5 + $0x10] sm:$0xff] %vm483_vm4, %v1613_v18  ;;  %489 = vst.msk [vmem:[#allocation5 + $0x18] sm:$0xff] %vm483_vm4, %v1613_v18 }
 0x103   : > { %474 = vst.msk [vmem:[#allocation2 + $0x4] sm:$0xf] %vm472_vm1, %v471_v37 }
 0x105   : > { %v492_v38 = vld [vmem:[#allocation3] sm:$0xf] }
 0x106   : > { %1440 = vmatprep.subr.msk.bf16.mxu1 %vm525_vm2, %v492_v38  ;;  %v527_v39 = vsel %vm525_vm2, %v492_v38, 0 }
 0x107   : > { %1381 = vmatpush3.bf16.msra.mxu1 %v527_v39  ;;  %v493_v40 = vld [vmem:[#allocation3 + $0x4] sm:$0xf] }
 0x108   : > { %1441 = vmatprep.subr.msk.bf16.mxu1 %vm525_vm2, %v493_v40  ;;  %v490_v41 = vld [vmem:[#allocation2] sm:$0xf]  ;;  %v623_v42 = vsel %vm525_vm2, %v493_v40, 0 }
 0x109   : > { %496 = vxpose.xlu0.c.b16.start.end [1/1] (short) (narrow) %v490_v41, 64 }
 0x10a   : > { %v491_v43 = vld [vmem:[#allocation2 + $0x4] sm:$0xf] }
 0x10b   : > { %594 = vxpose.xlu1.c.b16.start.end [1/1] (short) (narrow) %v491_v43, 64 }
 0x11b   : > { %354 = vperm.xlu1 %1487, %v324_v48  }
 0x11e   : > { %349 = vperm.xlu0 %1486, %v323_v49  }
 0x11f   : > { %364 = vperm.xlu1 %1487, %v326_v50  }
 0x122   : > { %359 = vperm.xlu0 %1486, %v325_v51  }
 0x123   : > { %993 = vperm.xlu1 %1487, %v983_v52  }
 0x126   : > { %988 = vperm.xlu0 %1486, %v982_v53  }
 0x127   : > { %1003 = vperm.xlu1 %1487, %v985_v54  }
 0x12a   : > { %998 = vperm.xlu0 %1486, %v984_v55  }
 0x12b   : > { %1128 = vperm.xlu1 %1487, %v1118_v56  }
 0x12e   : > { %1123 = vperm.xlu0 %1486, %v1117_v57  }
 0x12f   : > { %1138 = vperm.xlu1 %1487, %v1120_v58  }
 0x132   : > { %1133 = vperm.xlu0 %1486, %v1119_v59  }
 0x16f   : > { %v504_v60 = vpop.trf.xlu0 }
 0x170   : > { %1382 = vmatprep.mubr.msk.bf16.mxu1 %vm512_vm3, %v504_v60 }
 0x171   : > { %v602_v62 = vpop.trf.xlu1 }
 0x173   : > { %v505_v61 = vpop.trf.xlu0 }
 0x174   : > { %1383 = vmatmul.mubr.msk.bf16.vlgmr.msra.gmra.mrb[0].mxu1 %vm512_vm3, %v505_v61 }
 0x175   : > { %1391 = vmatpush3.bf16.msra.mxu1 %v623_v42  ;;  %v603_v1 = vpop.trf.xlu1 }
 0x176   : > { %1412 = vmatprep.subr.bf16.mxu1 %v1613_v18 }
 0x177   : > { %v506_v63 = vpop.trf.xlu0 }
 0x178   : > { %1386 = vmatprep.mubr.msk.bf16.mxu1 %vm512_vm3, %v506_v63 }
 0x179   : > { %v604_v2 = vpop.trf.xlu1 }
 0x17b   : > { %v507_v0 = vpop.trf.xlu0 }
 0x17c   : > { %1387 = vmatmul.mubr.msk.bf16.gmra.mrb[4].mxu1 %vm512_vm3, %v507_v0 }
 0x17d   : > { %1392 = vmatprep.mubr.msk.bf16.mxu1 %vm512_vm3, %v602_v62  ;;  %v605_v3 = vpop.trf.xlu1 }
 0x184   : > { %1393 = vmatmul.mubr.msk.bf16.vlgmr.msra.gmra.mrb[8].mxu1 %vm512_vm3, %v603_v1 }
 0x185   : > { %1396 = vmatprep.mubr.msk.bf16.mxu1 %vm512_vm3, %v604_v2 }
 0x18c   : > { %1397 = vmatmul.mubr.msk.bf16.gmra.mrb[12].mxu1 %vm512_vm3, %v605_v3 }
 0x18d   : > { %1420 = vmatprep.mubr.msk.bf16.mxu1 %vm1614_vm5, %v1613_v18 }
 0x19a   : > { %v355_v4 = vpop.permute.xlu1 %354 }
 0x19b   : > { %v454_v9 = vadd.f32 %v453_v47, %v355_v4 }
 0x19d   : > { %v350_v5 = vpop.permute.xlu0 %349 }
 0x19e   : > { %v451_v11 = vadd.f32 %v450_v45, %v350_v5  ;;  %v365_v12 = vpop.permute.xlu1 %364 }
 0x19f   : > { %v462_v15 = vadd.f32 %v1379_v46, %v365_v12 }
 0x1a0   : > { %v481_v13 = vpack.c.bf16 %v454_v9, %v451_v11 }
 0x1a1   : > { %v360_v14 = vpop.permute.xlu0 %359 }
 0x1a2   : > { %484 = vst.msk [vmem:[#allocation4] sm:$0xff] %vm483_vm4, %v481_v13  ;;  %v459_v16 = vadd.f32 %v1378_v44, %v360_v14 }
 0x1a4   : > { %v482_v17 = vpack.c.bf16 %v462_v15, %v459_v16 }
 0x1a6   : > { %485 = vst.msk [vmem:[#allocation4 + $0x8] sm:$0xff] %vm483_vm4, %v482_v17 }
 0x247   : > { %v1384_v19 = vpop.f32.mrb[0].mxu1 }
 0x248   : > { %v692_v20 = vsel %vm483_vm4, %v1384_v19, -inf  ;;  %v563_v21 = vpop.f32.mrb[1].mxu1 }
 0x249   : > { %v690_v22 = vsel %vm483_vm4, %v563_v21, -inf  ;;  %v1385_v23 = vpop.f32.mrb[2].mxu1 }
 0x24a   : > { %v693_v24 = vmax.f32 %v690_v22, %v692_v20  ;;  %v694_v25 = vsel %vm483_vm4, %v1385_v23, -inf  ;;  %v566_v26 = vpop.f32.mrb[3].mxu1 }
 0x24b   : > { %v691_v27 = vsel %vm483_vm4, %v566_v26, -inf }
 0x24c   : > { %v695_v28 = vmax.f32 %v691_v27, %v694_v25 }
 0x24f   : > { %v1821_v29 = vpop.f32.mrb[4].mxu1 }
 0x250   : > { %v579_v30 = vpop.f32.mrb[5].mxu1  ;;  %v700_v35 = vsel %vm483_vm4, %v1821_v29, -inf }
 0x251   : > { %v696_v31 = vsel %vm483_vm4, %v579_v30, -inf  ;;  %v1824_v32 = vpop.f32.mrb[6].mxu1 }
 0x252   : > { %v697_v33 = vmax.f32 %v693_v24, %v696_v31  ;;  %v582_v34 = vpop.f32.mrb[7].mxu1  ;;  %v702_v39 = vsel %vm483_vm4, %v1824_v32, -inf }
 0x253   : > { %v698_v36 = vsel %vm483_vm4, %v582_v34, -inf }
 0x254   : > { %v701_v37 = vmax.f32 %v697_v33, %v700_v35  ;;  %v699_v38 = vmax.f32 %v695_v28, %v698_v36 }
 0x256   : > { %v703_v40 = vmax.f32 %v699_v38, %v702_v39 }
 0x257   : > { %v1831_v41 = vpop.f32.mrb[8].mxu1 }
 0x258   : > { %v704_v42 = vmax.f32 %v701_v37, %v703_v40  ;;  %v713_v43 = vsel %vm483_vm4, %v1831_v41, -inf  ;;  %v1835_v44 = vpop.f32.mrb[9].mxu1 }
 0x259   : > { %v711_v45 = vsel %vm483_vm4, %v1835_v44, -inf  ;;  %v1839_v46 = vpop.f32.mrb[10].mxu1 }
 0x25a   : > { %v705_v47 = vrot.slane %v704_v42, 4  ;;  %v714_v48 = vmax.f32 %v711_v45, %v713_v43  ;;  %v715_v49 = vsel %vm483_vm4, %v1839_v46, -inf  ;;  %v1843_v50 = vpop.f32.mrb[11].mxu1 }
 0x25b   : > { %v712_v51 = vsel %vm483_vm4, %v1843_v50, -inf }
 0x25c   : > { %v706_v52 = vmax.f32 %v704_v42, %v705_v47  ;;  %v716_v53 = vmax.f32 %v712_v51, %v715_v49 }
 0x25e   : > { %v707_v54 = vrot.slane %v706_v52, 2 }
 0x25f   : > { %v1847_v55 = vpop.f32.mrb[12].mxu1 }
 0x260   : > { %v708_v56 = vmax.f32 %v706_v52, %v707_v54  ;;  %v1849_v57 = vpop.f32.mrb[13].mxu1  ;;  %v721_v63 = vsel %vm483_vm4, %v1847_v55, -inf }
 0x261   : > { %v717_v58 = vsel %vm483_vm4, %v1849_v57, -inf  ;;  %v1853_v59 = vpop.f32.mrb[14].mxu1 }
 0x262   : > { %v709_v60 = vrot.slane %v708_v56, 1  ;;  %v718_v61 = vmax.f32 %v714_v48, %v717_v58  ;;  %v1855_v62 = vpop.f32.mrb[15].mxu1  ;;  %v723_v4 = vsel %vm483_vm4, %v1853_v59, -inf }
 0x263   : > { %v719_v0 = vsel %vm483_vm4, %v1855_v62, -inf }
 0x264   : > { %v710_v1 = vmax.f32 %v708_v56, %v709_v60  ;;  %v722_v2 = vmax.f32 %v718_v61, %v721_v63  ;;  %v720_v3 = vmax.f32 %v716_v53, %v719_v0 }
 0x266   : > { %v732_v5 = vsub.f32 %v563_v21, %v710_v1  ;;  %v733_v9 = vsub.f32 %v566_v26, %v710_v1  ;;  %v734_v11 = vsub.f32 %v1384_v19, %v710_v1  ;;  %v735_v12 = vsub.f32 %v1385_v23, %v710_v1 }
 0x267   : > { %v736_v13 = vsub.f32 %v579_v30, %v710_v1  ;;  %v737_v14 = vsub.f32 %v582_v34, %v710_v1  ;;  %v738_v15 = vsub.f32 %v1821_v29, %v710_v1  ;;  %v739_v16 = vsub.f32 %v1824_v32, %v710_v1 }
 0x268   : > { %v748_v17 = vmul.f32 1.442695, %v732_v5  ;;  %v750_v20 = vmul.f32 1.442695, %v733_v9  ;;  %v752_v22 = vmul.f32 1.442695, %v734_v11  ;;  %v724_v24 = vmax.f32 %v720_v3, %v723_v4 }
 0x269   : > { %v754_v25 = vmul.f32 1.442695, %v735_v12  ;;  %v756_v28 = vmul.f32 1.442695, %v736_v13  ;;  %v758_v19 = vmul.f32 1.442695, %v737_v14 }
 0x26a   : > { %1496 = vpow2.f32 %v748_v17  ;;  %v725_v27 = vmax.f32 %v722_v2, %v724_v24  ;;  %v760_v26 = vmul.f32 1.442695, %v738_v15  ;;  %v762_v29 = vmul.f32 1.442695, %v739_v16 }
 0x26b   : > { %1498 = vpow2.f32 %v750_v20 }
 0x26c   : > { %1500 = vpow2.f32 %v752_v22  ;;  %v726_v21 = vrot.slane %v725_v27, 4 }
 0x26d   : > { %1502 = vpow2.f32 %v754_v25 }
 0x26e   : > { %v727_v23 = vmax.f32 %v725_v27, %v726_v21  ;;  %1504 = vpow2.f32 %v756_v28 }
 0x26f   : > { %1506 = vpow2.f32 %v758_v19 }
 0x270   : > { %v728_v30 = vrot.slane %v727_v23, 2  ;;  %1508 = vpow2.f32 %v760_v26 }
 0x271   : > { %1510 = vpow2.f32 %v762_v29 }
 0x272   : > { %v729_v31 = vmax.f32 %v727_v23, %v728_v30 }
 0x274   : > { %v1865_v32 = vpop.eup %1496  ;;  %v730_v33 = vrot.slane %v729_v31, 1 }
 0x275   : > { %v1867_v34 = vpop.eup %1498  ;;  %v780_v35 = vsel %vm483_vm4, %v1865_v32, 0.0 }
 0x276   : > { %v1871_v36 = vpop.eup %1500  ;;  %v781_v37 = vsel %vm483_vm4, %v1867_v34, 0.0  ;;  %v731_v38 = vmax.f32 %v729_v31, %v730_v33 }
 0x277   : > { %v1875_v39 = vpop.eup %1502  ;;  %v782_v40 = vadd.f32 %v781_v37, %v780_v35  ;;  %v783_v42 = vsel %vm483_vm4, %v1871_v36, 0.0 }
 0x278   : > { %v740_v43 = vsub.f32 %v1835_v44, %v731_v38  ;;  %v741_v45 = vsub.f32 %v1843_v50, %v731_v38  ;;  %v742_v47 = vsub.f32 %v1831_v41, %v731_v38  ;;  %v1882_v48 = vpop.eup %1504  ;;  %v743_v51 = vsub.f32 %v1839_v46, %v731_v38 }
 0x279   : > { %v784_v49 = vadd.f32 %v783_v42, %v782_v40  ;;  %v744_v52 = vsub.f32 %v1849_v57, %v731_v38  ;;  %v785_v53 = vsel %vm483_vm4, %v1875_v39, 0.0  ;;  %v745_v54 = vsub.f32 %v1855_v62, %v731_v38  ;;  %v1891_v58 = vpop.eup %1506 }
 0x27a   : > { %v746_v56 = vsub.f32 %v1847_v55, %v731_v38  ;;  %v747_v44 = vsub.f32 %v1853_v59, %v731_v38  ;;  %v764_v41 = vmul.f32 1.442695, %v740_v43  ;;  %v766_v60 = vmul.f32 1.442695, %v741_v45  ;;  %v1509_v57 = vpop.eup %1508 }
 0x27b   : > { %v786_v50 = vadd.f32 %v785_v53, %v784_v49  ;;  %v787_v61 = vsel %vm483_vm4, %v1882_v48, 0.0  ;;  %v768_v46 = vmul.f32 1.442695, %v742_v47  ;;  %v770_v63 = vmul.f32 1.442695, %v743_v51  ;;  %v1511_v1 = vpop.eup %1510 }
 0x27c   : > { %1512 = vpow2.f32 %v764_v41  ;;  %v789_v62 = vsel %vm483_vm4, %v1891_v58, 0.0  ;;  %v772_v55 = vmul.f32 1.442695, %v744_v52  ;;  %v791_v2 = vsel %vm483_vm4, %v1509_v57, 0.0 }
 0x27d   : > { %v788_v0 = vadd.f32 %v787_v61, %v786_v50  ;;  %1514 = vpow2.f32 %v766_v60  ;;  %v774_v3 = vmul.f32 1.442695, %v745_v54  ;;  %v793_v5 = vsel %vm483_vm4, %v1511_v1, 0.0 }
 0x27e   : > { %1516 = vpow2.f32 %v768_v46  ;;  %v776_v9 = vmul.f32 1.442695, %v746_v56  ;;  %v778_v12 = vmul.f32 1.442695, %v747_v44 }
 0x27f   : > { %v790_v59 = vadd.f32 %v789_v62, %v788_v0  ;;  %1518 = vpow2.f32 %v770_v63 }
 0x280   : > { %1520 = vpow2.f32 %v772_v55 }
 0x281   : > { %v792_v4 = vadd.f32 %v791_v2, %v790_v59  ;;  %1522 = vpow2.f32 %v774_v3 }
 0x282   : > { %1524 = vpow2.f32 %v776_v9 }
 0x283   : > { %v794_v11 = vadd.f32 %v793_v5, %v792_v4  ;;  %1526 = vpow2.f32 %v778_v12 }
 0x285   : > { %v795_v13 = vrot.slane %v794_v11, 4 }
 0x286   : > { %v1513_v14 = vpop.eup %1512 }
 0x287   : > { %v796_v15 = vadd.f32 %v795_v13, %v794_v11  ;;  %v1515_v16 = vpop.eup %1514  ;;  %v801_v17 = vsel %vm483_vm4, %v1513_v14, 0.0 }
 0x288   : > { %v1517_v20 = vpop.eup %1516  ;;  %v802_v24 = vsel %vm483_vm4, %v1515_v16, 0.0 }
 0x289   : > { %v797_v22 = vrot.slane %v796_v15, 2  ;;  %v1519_v25 = vpop.eup %1518  ;;  %v803_v27 = vadd.f32 %v802_v24, %v801_v17  ;;  %v804_v21 = vsel %vm483_vm4, %v1517_v20, 0.0 }
 0x28a   : > { %v1521_v19 = vpop.eup %1520  ;;  %v806_v30 = vsel %vm483_vm4, %v1519_v25, 0.0 }
 0x28b   : > { %v798_v28 = vadd.f32 %v797_v22, %v796_v15  ;;  %v805_v23 = vadd.f32 %v804_v21, %v803_v27  ;;  %v1523_v29 = vpop.eup %1522  ;;  %v808_v35 = vsel %vm483_vm4, %v1521_v19, 0.0  ;;  %v495_v21 = vld [vmem:[#allocation4 + $0x8] sm:$0xff] }
 0x28c   : > { %v1525_v37 = vpop.eup %1524  ;;  %v810_v40 = vsel %vm483_vm4, %v1523_v29, 0.0 }
 0x28d   : > { %v799_v26 = vrot.slane %v798_v28, 1  ;;  %v807_v31 = vadd.f32 %v806_v30, %v805_v23  ;;  %v1527_v42 = vpop.eup %1526  ;;  %v812_v45 = vsel %vm483_vm4, %v1525_v37, 0.0  ;;  %v840_v23 = vld [vmem:[#allocation5] sm:$0xff]  ;;  %v841_v30 = vld [vmem:[#allocation5 + $0x8] sm:$0xff] }
 0x28e   : > { %v814_v49 = vsel %vm483_vm4, %v1527_v42, 0.0 }
 0x28f   : > { %v800_v33 = vadd.f32 %v799_v26, %v798_v28  ;;  %v809_v38 = vadd.f32 %v808_v35, %v807_v31 }
 0x291   : > { %1528 = vrcp.f32 %v800_v33  ;;  %v811_v43 = vadd.f32 %v810_v40, %v809_v38 }
 0x293   : > { %v813_v47 = vadd.f32 %v812_v45, %v811_v43  ;;  %v843_v45 = vld [vmem:[#allocation5 + $0x18] sm:$0xff] }
 0x295   : > { %v815_v51 = vadd.f32 %v814_v49, %v813_v47 }
 0x297   : > { %v816_v52 = vrot.slane %v815_v51, 4 }
 0x299   : > { %v817_v53 = vadd.f32 %v816_v52, %v815_v51 }
 0x29b   : > { %v1529_v54 = vpop.eup %1528  ;;  %v818_v56 = vrot.slane %v817_v53, 2 }
 0x29c   : > { %v824_v44 = vmul.f32 %v1529_v54, %v1865_v32  ;;  %v825_v50 = vmul.f32 %v1529_v54, %v1867_v34  ;;  %v826_v41 = vmul.f32 %v1529_v54, %v1871_v36  ;;  %v827_v60 = vmul.f32 %v1529_v54, %v1875_v39 }
 0x29d   : > { %v828_v61 = vmul.f32 %v1529_v54, %v1882_v48  ;;  %v829_v46 = vmul.f32 %v1529_v54, %v1891_v58  ;;  %v830_v63 = vmul.f32 %v1529_v54, %v1509_v57  ;;  %v819_v0 = vadd.f32 %v818_v56, %v817_v53 }
 0x29e   : > { %v844_v62 = vpack.c.bf16 %v825_v50, %v824_v44  ;;  %v831_v55 = vmul.f32 %v1529_v54, %v1511_v1  ;;  %v845_v59 = vpack.c.bf16 %v827_v60, %v826_v41  ;;  %v1493_v50 = vld [vmem:[%s2011_s4 + $0x8] sm:$0xff]   ;;  %v1494_v41 = vld [vmem:[%s2013_s6] sm:$0xff]   ;;  %v989_v60 = vpop.permute.xlu0 %988 }
 0x29f   : > { %v846_v2 = vpack.c.bf16 %v829_v46, %v828_v61  ;;  %v820_v3 = vrot.slane %v819_v0, 1  ;;  %v994_v61 = vpop.permute.xlu1 %993 }
 0x2a0   : > { %v856_v4 = vsel %vm483_vm4, %v844_v62, 0  ;;  %v847_v32 = vpack.c.bf16 %v831_v55, %v830_v63  ;;  %v859_v36 = vsel %vm483_vm4, %v845_v59, 0 }
 0x2a1   : > { %1401 = vmatpush3.bf16.xpose.msra.mxu0 %v856_v4  ;;  %v821_v34 = vadd.f32 %v820_v3, %v819_v0  ;;  %v862_v48 = vsel %vm483_vm4, %v846_v2, 0 }
 0x2a2   : > { %1402 = vmatprep.subr.bf16.mxu0 %v1613_v18  ;;  %v999_v46 = vpop.permute.xlu0 %998 }
 0x2a3   : > { %1530 = vrcp.f32 %v821_v34  ;;  %v1004_v55 = vpop.permute.xlu1 %1003 }
 0x2a9   : > { %1403 = vmatpush3.bf16.xpose.msra.mxu0 %v859_v36 }
 0x2aa   : > { %1404 = vmatprep.subr.bf16.mxu0 %v1613_v18 }
 0x2ad   : > { %v1531_v39 = vpop.eup %1530 }
 0x2ae   : > { %v832_v58 = vmul.f32 %v1531_v39, %v1513_v14  ;;  %v833_v57 = vmul.f32 %v1531_v39, %v1515_v16  ;;  %v834_v1 = vmul.f32 %v1531_v39, %v1517_v20  ;;  %v835_v5 = vmul.f32 %v1531_v39, %v1519_v25  ;;  %v494_v20 = vld [vmem:[#allocation4] sm:$0xff] }
 0x2af   : > { %v836_v9 = vmul.f32 %v1531_v39, %v1521_v19  ;;  %v837_v11 = vmul.f32 %v1531_v39, %v1523_v29  ;;  %v838_v12 = vmul.f32 %v1531_v39, %v1525_v37  ;;  %v839_v13 = vmul.f32 %v1531_v39, %v1527_v42  ;;  %v1492_v19 = vld [vmem:[%s2011_s4] sm:$0xff]   ;;  %v842_v42 = vld [vmem:[#allocation5 + $0x10] sm:$0xff] }
 0x2b0   : > { %v848_v15 = vpack.c.bf16 %v833_v57, %v832_v58  ;;  %v849_v17 = vpack.c.bf16 %v835_v5, %v834_v1  ;;  %v865_v14 = vsel %vm483_vm4, %v847_v32, 0 }
 0x2b1   : > { %1405 = vmatpush3.bf16.xpose.msra.mxu0 %v862_v48  ;;  %v850_v22 = vpack.c.bf16 %v837_v11, %v836_v9  ;;  %v851_v24 = vpack.c.bf16 %v839_v13, %v838_v12 }
 0x2b2   : > { %1406 = vmatprep.subr.bf16.mxu0 %v1613_v18  ;;  %v912_v27 = vsel %vm483_vm4, %v848_v15, 0  ;;  %v915_v16 = vsel %vm483_vm4, %v849_v17, 0 }
 0x2b3   : > { %1413 = vmatpush3.bf16.xpose.msra.mxu1 %v912_v27  ;;  %v918_v25 = vsel %vm483_vm4, %v850_v22, 0  ;;  %v921_v28 = vsel %vm483_vm4, %v851_v24, 0 }
 0x2b4   : > { %1414 = vmatprep.subr.bf16.mxu1 %v1613_v18 }
 0x2b9   : > { %1407 = vmatpush3.bf16.xpose.msra.mxu0 %v865_v14 }
 0x2bb   : > { %1415 = vmatpush3.bf16.xpose.msra.mxu1 %v915_v16 }
 0x2bc   : > { %1416 = vmatprep.subr.bf16.mxu1 %v1613_v18 }
 0x2c0   : > { %1409 = vmatmul.mubr.msk.bf16.vlgmr.msra.gmra.mrb[8].mxu0 %vm483_vm4, %v494_v20 }
 0x2c1   : > { %1428 = vmatprep.mubr.msk.bf16.mxu0 %vm387_vm0, %v1492_v19 }
 0x2c3   : > { %1417 = vmatpush3.bf16.xpose.msra.mxu1 %v918_v25 }
 0x2c4   : > { %1418 = vmatprep.subr.bf16.mxu1 %v1613_v18 }
 0x2cb   : > { %1419 = vmatpush3.bf16.xpose.msra.mxu1 %v921_v28 }
 0x2d2   : > { %1421 = vmatmul.mubr.msk.bf16.vlgmr.msra.gmra.mrb[16].mxu1 %vm483_vm4, %v495_v21 }
 0x393   : > { %v901_v26 = vpop.f32.mrb[8].mxu0 }
 0x394   : > { %v964_v29 = vadd.f32 %v901_v26, %v840_v23  ;;  %v1410_v31 = vpop.f32.mrb[9].mxu0 }
 0x395   : > { %v904_v33 = vpop.f32.mrb[10].mxu0 }
 0x396   : > { %968 = vst.msk [vmem:[#allocation5] sm:$0xff] %vm483_vm4, %v964_v29  ;;  %v965_v18 = vadd.f32 %v904_v33, %v841_v30  ;;  %v1411_v35 = vpop.f32.mrb[11].mxu0 }
 0x398   : > { %969 = vst.msk [vmem:[#allocation5 + $0x8] sm:$0xff] %vm483_vm4, %v965_v18 }
 0x39d   : > { %v972_v37 = vld [vmem:[#allocation5] sm:$0xff] }
 0x39f   : > { %v973_v38 = vld [vmem:[#allocation5 + $0x8] sm:$0xff] }
 0x3a0   : > { %v976_v40 = vpack.c.bf16 %v973_v38, %v972_v37 }
 0x3a2   : > { %1424 = vmatprep.subr.bf16.mxu0 %v976_v40 }
 0x3a3   : > { %1425 = vmatpush3.bf16.msra.mxu0 %v976_v40 }
 0x3a5   : > { %v957_v43 = vpop.f32.mrb[16].mxu1 }
 0x3a6   : > { %v966_v47 = vadd.f32 %v957_v43, %v842_v42  ;;  %v1422_v49 = vpop.f32.mrb[17].mxu1 }
 0x3a7   : > { %v960_v51 = vpop.f32.mrb[18].mxu1 }
 0x3a8   : > { %970 = vst.msk [vmem:[#allocation5 + $0x10] sm:$0xff] %vm483_vm4, %v966_v47  ;;  %v967_v52 = vadd.f32 %v960_v51, %v843_v45  ;;  %v1423_v53 = vpop.f32.mrb[19].mxu1 }
 0x3a9   : > { %v1495_v53 = vld [vmem:[%s2013_s6 + $0x8] sm:$0xff]  }
 0x3aa   : > { %971 = vst.msk [vmem:[#allocation5 + $0x18] sm:$0xff] %vm483_vm4, %v967_v52 }
 0x3af   : > { %v974_v54 = vld [vmem:[#allocation5 + $0x10] sm:$0xff] }
 0x3b1   : > { %v975_v56 = vld [vmem:[#allocation5 + $0x18] sm:$0xff] }
 0x3b2   : > { %v977_v44 = vpack.c.bf16 %v975_v56, %v974_v54  ;;  %v1124_v54 = vpop.permute.xlu0 %1123  ;;  %v1129_v56 = vpop.permute.xlu1 %1128 }
 0x3b4   : > { %1426 = vmatprep.subr.bf16.mxu0 %v977_v44 }
 0x3b5   : > { %1427 = vmatpush3.bf16.msra.mxu0 %v977_v44 }
 0x3b6   : > { %v1134_v44 = vpop.permute.xlu0 %1133 }
 0x3b8   : > { %1429 = vmatmul.mubr.msk.bf16.vlgmr.msra.gmra.mrb[12].mxu0 %vm387_vm0, %v1493_v50 }
 0x3b9   : > { %1436 = vmatprep.mubr.msk.bf16.mxu0 %vm387_vm0, %v1494_v41 }
 0x48b   : > { %v1430_v63 = vpop.f32.mrb[12].mxu0 }
 0x48c   : > { %v1065_v0 = vadd.f32 %v1430_v63, %v999_v46  ;;  %v1056_v62 = vpop.f32.mrb[13].mxu0 }
 0x48d   : > { %v1057_v59 = vadd.f32 %v1056_v62, %v989_v60  ;;  %v1431_v2 = vpop.f32.mrb[14].mxu0 }
 0x48e   : > { %v1073_v3 = vmin.f32 %v1065_v0, 30.0  ;;  %v1068_v4 = vadd.f32 %v1431_v2, %v1004_v55  ;;  %v1059_v32 = vpop.f32.mrb[15].mxu0 }
 0x48f   : > { %v1071_v34 = vmin.f32 %v1057_v59, 30.0  ;;  %v1060_v36 = vadd.f32 %v1059_v32, %v994_v61  ;;  %v1139_v61 = vpop.permute.xlu1 %1138 }
 0x490   : > { %v1079_v39 = vmul.f32 1.442695, %v1073_v3  ;;  %v1074_v48 = vmin.f32 %v1068_v4, 30.0 }
 0x491   : > { %v1075_v58 = vmul.f32 1.442695, %v1071_v34  ;;  %v1072_v57 = vmin.f32 %v1060_v36, 30.0 }
 0x492   : > { %1532 = vpow2.f32 %v1079_v39  ;;  %v1081_v1 = vmul.f32 1.442695, %v1074_v48 }
 0x493   : > { %1534 = vpow2.f32 %v1075_v58  ;;  %v1077_v5 = vmul.f32 1.442695, %v1072_v57 }
 0x494   : > { %1536 = vpow2.f32 %v1081_v1 }
 0x495   : > { %1538 = vpow2.f32 %v1077_v5 }
 0x49c   : > { %v1533_v9 = vpop.eup %1532 }
 0x49d   : > { %v1535_v11 = vpop.eup %1534  ;;  %v1085_v12 = vadd.f32 1.0, %v1533_v9 }
 0x49e   : > { %v1537_v13 = vpop.eup %1536  ;;  %v1083_v15 = vadd.f32 1.0, %v1535_v11 }
 0x49f   : > { %v1539_v17 = vpop.eup %1538  ;;  %v1089_v22 = vmul.f32 %v1085_v12, %v1085_v12  ;;  %v1086_v24 = vadd.f32 1.0, %v1537_v13 }
 0x4a0   : > { %v1087_v27 = vmul.f32 %v1083_v15, %v1083_v15  ;;  %v1084_v14 = vadd.f32 1.0, %v1539_v17 }
 0x4a1   : > { %v1101_v16 = vadd.f32 1.0, %v1089_v22  ;;  %v1090_v20 = vmul.f32 %v1086_v24, %v1086_v24  ;;  %v1321_v23 = vadd.f32 -1.0, %v1089_v22 }
 0x4a2   : > { %v1099_v25 = vadd.f32 1.0, %v1087_v27  ;;  %v1088_v28 = vmul.f32 %v1084_v14, %v1084_v14  ;;  %v1319_v30 = vadd.f32 -1.0, %v1087_v27 }
 0x4a3   : > { %1540 = vrcp.f32 %v1101_v16  ;;  %v1102_v21 = vadd.f32 1.0, %v1090_v20  ;;  %v1322_v26 = vadd.f32 -1.0, %v1090_v20  ;;  %v1097_v18 = vmul.f32 %v1321_v23, %v1065_v0 }
 0x4a4   : > { %1542 = vrcp.f32 %v1099_v25  ;;  %v1100_v19 = vadd.f32 1.0, %v1088_v28  ;;  %v1320_v29 = vadd.f32 -1.0, %v1088_v28  ;;  %v1095_v38 = vmul.f32 %v1319_v30, %v1057_v59 }
 0x4a5   : > { %1544 = vrcp.f32 %v1102_v21  ;;  %v1098_v35 = vmul.f32 %v1322_v26, %v1068_v4 }
 0x4a6   : > { %1546 = vrcp.f32 %v1100_v19  ;;  %v1096_v40 = vmul.f32 %v1320_v29, %v1060_v36 }
 0x4ad   : > { %v1541_v31 = vpop.eup %1540 }
 0x4ae   : > { %v1543_v33 = vpop.eup %1542  ;;  %v1109_v43 = vmul.f32 %v1541_v31, %v1097_v18 }
 0x4af   : > { %v1545_v37 = vpop.eup %1544  ;;  %v1107_v47 = vmul.f32 %v1543_v33, %v1095_v38 }
 0x4b0   : > { %v1547_v42 = vpop.eup %1546  ;;  %v1110_v45 = vmul.f32 %v1545_v37, %v1098_v35 }
 0x4b1   : > { %v1108_v49 = vmul.f32 %v1547_v42, %v1096_v40 }
 0x4b2   : > { %v1116_v51 = vpack.c.bf16 %v1110_v45, %v1109_v43 }
 0x4b3   : > { %v1115_v52 = vpack.c.bf16 %v1108_v49, %v1107_v47 }
 0x4b5   : > { %1432 = vmatprep.subr.bf16.mxu0 %v1115_v52 }
 0x4b6   : > { %1433 = vmatpush3.bf16.msra.mxu0 %v1115_v52 }
 0x4b7   : > { %1434 = vmatprep.subr.bf16.mxu0 %v1116_v51 }
 0x4ba   : > { %1435 = vmatpush3.bf16.msra.mxu0 %v1116_v51 }
 0x4bd   : > { %1437 = vmatmul.mubr.msk.bf16.vlgmr.msra.gmra.mrb[16].mxu0 %vm387_vm0, %v1495_v53 }
 0x590   : > { %v1438_v50 = vpop.f32.mrb[16].mxu0 }
 0x591   : > { %v1200_v41 = vadd.f32 %v1438_v50, %v1134_v44  ;;  %v1191_v60 = vpop.f32.mrb[17].mxu0 }
 0x592   : > { %v1192_v46 = vadd.f32 %v1191_v60, %v1124_v54  ;;  %v1439_v63 = vpop.f32.mrb[18].mxu0 }
 0x593   : > { %v1208_v0 = vadd.f32 %v1200_v41, %v1736_v8  ;;  %v1203_v62 = vadd.f32 %v1439_v63, %v1139_v61  ;;  %v1194_v55 = vpop.f32.mrb[19].mxu0 }
 0x594   : > { %v1206_v59 = vadd.f32 %v1192_v46, %v1732_v6  ;;  %v1195_v2 = vadd.f32 %v1194_v55, %v1129_v56 }
 0x595   : > { %1212 = vst.msk [vmem:[%s298_s22 + $0x10] sm:$0xff] %vm483_vm4, %v1208_v0  ;;  %v1209_v3 = vadd.f32 %v1203_v62, %v1740_v10 }
 0x596   : > { %1210 = vst.msk [vmem:[%s298_s22] sm:$0xff] %vm483_vm4, %v1206_v59  ;;  %v1207_v8 = vadd.f32 %v1195_v2, %v1734_v7 }
 0x597   : > { %1213 = vst.msk [vmem:[%s298_s22 + $0x18] sm:$0xff] %vm483_vm4, %v1209_v3 }
 0x598   : > { %1211 = vst.msk [vmem:[%s298_s22 + $0x8] sm:$0xff] %vm483_vm4, %v1207_v8 }
 0x599   : > { %1561 = shalt.err (!%p1558_p3)
}
 0x59a   : > { %s1562_s19 = scalar_lea.hbm %s1958_s10, 512  ;;  %s1566_s22 = scalar_lea.hbm %s2015_s8, 1024 }
 0x59b   : > { %p1563_p4 = scmp.ne.s32.totalorder %s1958_s10, %s1562_s19  ;;  %p1567_p9 = scmp.lt.u32.totalorder %s1958_s10, %s2015_s8 }
 0x59c   : > { %p1568_p10 = scmp.lt.u32.totalorder %s1566_s22, %s1562_s19  ;;  %p1570_p12 = scmp.lt.u32.totalorder %s1562_s19, %s1958_s10 }
 0x59d   : > { %p1564_p7 = pnand %p1563_p4, %p1701_p5 }
 0x59e   : > { %p1569_p11 = por %p1568_p10, %p1567_p9 }
 0x59f   : > { %p1565_p8 = pneg %p1564_p7 }
 0x5a0   : > { %p1571_p13 = por %p1570_p12, %p1569_p11 }
 0x5a2   : > { %p1572_p0 = pnand %p1571_p13, %p1565_p8 }
 0x5a4   : > { %1575 = shalt.err (!%p1572_p0)
}
 0x5a5   : > { %s1616_s26 = smov 128   ;;  %s1617_s12 = smov 8  }
 0x5a6   : > { %1442 = dma.vmem_to_hbm [thread:$0]  (%p1701_p5), %s1960_s23, 512, %s1958_s10, %s1966_s9, %s1616_s26, %s1616_s26, %s1617_s12  }
 0x5a7 PF: > { %p1448_p1 = scmp.ge.s32.totalorder %s1610_s30, 2  ;;  %s1243_s13 = sand.u32 1, %s1598_s27  }
 0x5a8   : > { %s1244_s17 = scalar_lea.sflag [#allocation7], %s1243_s13 }
 0x5a9   : > { %p1445_p2 = pnand %p1448_p1, %p1705_p6 }
 0x5ab   : > { %1593 = dma.done.wait (!%p1445_p2), %s1244_s17, 512  }
 0x5ac   : > { %1595 = vsyncadd (!%p1445_p2), %s1244_s17, 4294966784  ;;  %p18_p3 = scmp.ge.s32.totalorder %s1688_s11, 4   ;;  %s2018_s27 = smov %s1602_s28 }
 0x5ad   : > { %s2019_s28 = smov %s1606_s29  ;;  %s2020_s29 = smov %s1699_s14 }
 0x5ae   : > { %s2021_s30 = smov %s1688_s11  ;;  %20 = sbr.rel (!%p18_p3) target bundleno = 3 (0x3), region = 87 }
 0x5b5   :  { %1249 = vsyncpa [#allocation7], 1 }
 0x5b6   :  { %1251 = vsyncpa [#allocation7 + $0x1], 1 }

</bundles_post_ra>
